<compile_context>
chip_gen: v5e
topology: v5e:2x2
jax: 0.10.0
libtpu: 0.0.40
codegen_flags: <defaults>
</compile_context>

<pallas_src>
import jax
import jax.numpy as jnp
from jax.experimental import pallas as pl
from jax.experimental.pallas import tpu as pltpu

D_MODEL = 1
K_DIM = 1
V_DIM = 1
N_HEAD = 1
LANE = 128

# The fused-scalar shortcut is ONLY valid because the softmax axis has size
# d_model == 1 (softmax == 1 identically) and every Linear is 1x1.
assert D_MODEL == 1 and K_DIM == 1 and V_DIM == 1 and N_HEAD == 1


def affine_kernel(scalars_ref, v_ref, o_ref):
    # scalars_ref (SMEM, f32[2]): [w_eff, b_eff] with
    #   w_eff = Wv * Wo,  b_eff = bv * Wo + bo
    w = scalars_ref[0]
    b = scalars_ref[1]
    # TODO(synk): dropout(p=0.1) after the softmax is identity at inference
    # (and torch.nn.dropout as written would not construct); omitted.
    o_ref[...] = (v_ref[...].astype(jnp.float32) * w + b).astype(o_ref.dtype)


def _round_up(x, m):
    return ((x + m - 1) // m) * m


def model_forward(query, key, value, params, *, block_rows=2048):
    """Mirrors Model.forward for d_model = k_dim = v_dim = n_head = 1.

    query / key are accepted for interface fidelity but (softmax over a
    size-1 axis == 1) do not influence the output.
    """
    del query, key  # output is independent of q/k for d_model == 1
    wk, bk, wv, bv, wo, bo, scale = [params[i] for i in range(7)]
    del wk, bk, scale

    # Fold the affine chain at trace time: out = v * (wv*wo) + (bv*wo + bo).
    w_eff = wv * wo
    b_eff = bv * wo + bo
    scalars = jnp.stack([w_eff, b_eff]).astype(jnp.float32)

    vf = value.reshape(-1)          # keep native dtype; cast happens in-vreg
    n = vf.shape[0]
    rows = -(-n // LANE)

    # Pad only when n is not lane-aligned; a contiguous reshape alone is free.
    pad = rows * LANE - n
    if pad:
        vf = jnp.pad(vf, (0, pad))
    v2d = vf.reshape(rows, LANE)

    # Tile selection: big blocks amortize per-step pipeline overhead; keep at
    # least 2 grid steps whenever possible so a 2-TC chip (v7x) shards the DMA.
    if rows >= 2 * block_rows:
        blk = block_rows
    elif rows >= 16:
        blk = _round_up(-(-rows // 2), 8)   # ~half the rows, sublane-aligned
    else:
        blk = rows                          # single block == full row extent
    grid = -(-rows // blk)                  # ragged last block handled by Pallas

    out2d = pl.pallas_call(
        affine_kernel,
        out_shape=jax.ShapeDtypeStruct((rows, LANE), value.dtype),
        grid_spec=pltpu.PrefetchScalarGridSpec(
            num_scalar_prefetch=0,
            grid=(grid,),
            in_specs=[
                pl.BlockSpec(memory_space=pltpu.MemorySpace.SMEM),  # fused scalars
                pl.BlockSpec((blk, LANE), lambda i: (i, 0)),        # value tiles
            ],
            out_specs=pl.BlockSpec((blk, LANE), lambda i: (i, 0)),
        ),
        compiler_params=pltpu.CompilerParams(
            dimension_semantics=("parallel",),
        ),
    )(scalars, v2d)

    out = out2d.reshape(-1)
    if pad:
        out = out[:n]
    # PyTorch output shape is (-1, n_head * d_model) == (N, 1).
    return out.reshape(-1, N_HEAD * D_MODEL)


def reference_forward(query, key, value, params):
    """Pure-JAX transcription of the PyTorch forward (full math, no shortcuts)."""
    wk, bk, wv, bv, wo, bo, scale = [params[i] for i in range(7)]
    d_k = key.shape[-1]
    q = query.reshape(-1, N_HEAD, D_MODEL)
    k = jnp.swapaxes(key.reshape(-1, N_HEAD, d_k), 1, 2)
    v = jnp.swapaxes(value.reshape(-1, N_HEAD, d_k), 1, 2)
    q = (q * wk + bk).reshape(-1, N_HEAD, D_MODEL, 1)
    k = (k * wk + bk).reshape(-1, N_HEAD, 1, D_MODEL)
    v = (v * wv + bv).reshape(-1, N_HEAD, 1, D_MODEL)
    qk = q * k
    s = qk * scale
    p = jax.nn.softmax(s, axis=-1)
    out = jnp.matmul(p, v)
    out = jnp.swapaxes(out, 1, 2).reshape(-1, N_HEAD * D_MODEL)
    return out * wo + bo


if __name__ == "__main__":
    key0 = jax.random.PRNGKey(0)
    k_q, k_k, k_v, k_w = jax.random.split(key0, 4)

    # Small shapes consistent with the module: (batch=2, seq=4, dim=1)
    B, S = 2, 4
    query = jax.random.normal(k_q, (B, S, K_DIM), dtype=jnp.float32)
    key = jax.random.normal(k_k, (B, S, K_DIM), dtype=jnp.float32)
    value = jax.random.normal(k_v, (B, S, V_DIM), dtype=jnp.float32)

    # Deterministic "Linear(1,1)" parameters (PyTorch-style uniform, fan_in=1)
    w = jax.random.uniform(k_w, (6,), minval=-1.0, maxval=1.0, dtype=jnp.float32)
    scale = jnp.float32(D_MODEL ** (-0.5))
    params = jnp.concatenate([w, scale[None]]).astype(jnp.float32)  # [Wk,bk,Wv,bv,Wo,bo,scale]

    out = model_forward(query, key, value, params)
    out = jax.block_until_ready(out)

    ref = reference_forward(query, key, value, params)
    assert out.shape == (B * S, N_HEAD * D_MODEL)
    assert jnp.allclose(out, ref, atol=1e-5, rtol=1e-5), (out, ref)

    print("KERNEL_OK")
</pallas_src>

<mosaic_0001>
module attributes {stable_mosaic.version = 11 : i64} {
  func.func @affine_kernel(%arg0: i32, %arg1: memref<2xf32, #tpu.memory_space<smem>>, %arg2: memref<1x128xf32, #tpu.memory_space<vmem>>, %arg3: memref<1x128xf32, #tpu.memory_space<vmem>>) attributes {dimension_semantics = [#tpu.dimension_semantics<parallel>], iteration_bounds = array<i64: 1>, scalar_prefetch = 0 : i64, scratch_operands = 0 : i64, tpu.core_type = #tpu.core_type<tc>, window_params = [{transform_indices = @transform_0, window_bounds = array<i64: 2>}, {transform_indices = @transform_1, window_bounds = array<i64: 1, 128>}, {transform_indices = @transform_2, window_bounds = array<i64: 1, 128>}]} {
    %c0 = arith.constant 0 : index
    %0 = memref.load %arg1[%c0] : memref<2xf32, #tpu.memory_space<smem>>
    %c1 = arith.constant 1 : index
    %1 = memref.load %arg1[%c1] : memref<2xf32, #tpu.memory_space<smem>>
    %c0_0 = arith.constant 0 : index
    %c0_1 = arith.constant 0 : index
    %2 = vector.load %arg2[%c0_0, %c0_1] : memref<1x128xf32, #tpu.memory_space<vmem>>, vector<1x128xf32>
    %3 = vector.broadcast %0 : f32 to vector<1x128xf32>
    %4 = arith.mulf %2, %3 : vector<1x128xf32>
    %5 = vector.broadcast %1 : f32 to vector<1x128xf32>
    %6 = arith.addf %4, %5 : vector<1x128xf32>
    %c0_2 = arith.constant 0 : index
    %c0_3 = arith.constant 0 : index
    %7 = vector.load %arg3[%c0_2, %c0_3] : memref<1x128xf32, #tpu.memory_space<vmem>>, vector<1x128xf32>
    tpu.vector_store %arg3[%c0_2, %c0_3], %6 {strides = array<i32>} : memref<1x128xf32, #tpu.memory_space<vmem>>, vector<1x128xf32>,
    return
  }
  func.func @transform_0(%arg0: i32) -> i32 {
    %c0_i32 = arith.constant 0 : i32
    %c0_i32_0 = arith.constant 0 : i32
    return %c0_i32 : i32
  }
  func.func @transform_1(%arg0: i32) -> (i32, i32) {
    %c0_i32 = arith.constant 0 : i32
    %c0_i32_0 = arith.constant 0 : i32
    return %arg0, %c0_i32 : i32, i32
  }
  func.func @transform_2(%arg0: i32) -> (i32, i32) {
    %c0_i32 = arith.constant 0 : i32
    %c0_i32_0 = arith.constant 0 : i32
    return %arg0, %c0_i32 : i32, i32
  }
}

</mosaic_0001>

<bundles_post_ra>
// kernel: tpu_custom_call.1
= control target key start
LH: loop header
LB: loop body
LE: loop exit
PB: predicated region body
PF: predicated region fallthrough
CT: control target
= control target key end

     0   :  { %7 = vsyncpa [#allocation5], 0  ;;  %s162_s0 = inlined_call_operand.hbm [shape: f32[2], index: 0, kind: input, shape index: {}]   ;;  %s163_s1 = inlined_call_operand.hbm [shape: f32[1,128], index: 1, kind: input, shape index: {}]   ;;  %s164_s2 = inlined_call_operand.hbm [shape: f32[1,128], index: 2, kind: output, shape index: {}]  }
   0x1   :  { %8 = vsyncpa [#allocation3], 0 }
   0x2   :  { %9 = vsyncpa [#allocation4], 0  ;;  %s15_s11 = sshll.u32 %s162_s0, 4  ;;  %s24_s14 = sshll.u32 %s163_s1, 4  ;;  %s16_s11 = int_to_ptr.hbm [resolvable:$true] %s15_s11  ;;  %s25_s14 = int_to_ptr.hbm [resolvable:$true] %s24_s14 }
   0x3   :  { %s135_s15 = smov [#allocation2]   ;;  %s136_s16 = smov [#allocation6]  }
   0x4   :  { %18 = dma.hbm_to_smem %s16_s11, 16, %s135_s15, [#allocation5]  }
   0x5   :  { %s26_s17 = sshll.u32 %s136_s16, 4  ;;  %s27_s17 = int_to_ptr.vmem [resolvable:$true] %s26_s17 }
   0x6   :  { %29 = dma.hbm_to_vmem [thread:$0]  %s25_s14, 16, %s27_s17, [#allocation3]  }
   0x7   :  { %129 = dma.done.wait [#allocation5], 16  }
   0x8   :  { %130 = vsyncadd [#allocation5], 4294967280 }
   0x9   :  { %131 = dma.done.wait [#allocation3], 16  }
   0xa   :  { %132 = vsyncadd [#allocation3], 4294967280 }
   0xb   :  { %38 = sfence }
   0xc   :  { %s39_s18 = sld [smem:[#allocation2]]  ;;  %v41_v0 = vld [vmem:[#allocation6] sm:$0x1]  ;;  %s137_s0 = smov [#allocation7]  }
   0xd   :  { %s65_s19 = sld [smem:[#allocation2 + $0x1]]  ;;  %s52_s20 = sshll.u32 %s137_s0, 4  ;;  %s53_s20 = int_to_ptr.vmem [resolvable:$true] %s52_s20 }
   0xe   :  { %s54_s22 = sshll.u32 %s164_s2, 4  ;;  %s55_s22 = int_to_ptr.hbm [resolvable:$true] %s54_s22 }
  0x12   :  { %v42_v1 = vstv %s39_s18 }
  0x13   :  { %v43_v2 = vmul.f32 %v42_v1, %v41_v0  ;;  %v44_v3 = vstv %s65_s19 }
  0x15   :  { %v45_v4 = vadd.f32 %v44_v3, %v43_v2 }
  0x17   :  { %46 = vst [vmem:[#allocation7] sm:$0x1] %v45_v4 }
  0x18   :  { %57 = dma.vmem_to_hbm [thread:$0]  %s53_s20, 16, %s55_s22, [#allocation4]  }
  0x19   :  { %133 = dma.done.wait [#allocation4], 16  }
  0x1a   :  { %134 = vsyncadd [#allocation4], 4294967280 }
  0x1b   :  { %62 = vsyncpa [#allocation3], 1 }
  0x1c   :  { %63 = vsyncpa [#allocation4], 1 }
  0x1d   :  { %64 = vsyncpa [#allocation5], 1 }

</bundles_post_ra>
